<compile_context>
chip_gen: v7x
topology: tpu7x:2x2x1
jax: 0.10.0
libtpu: 0.0.40
codegen_flags: <defaults>
</compile_context>

<pallas_src>
import functools

import jax
import jax.numpy as jnp
from jax.experimental import pallas as pl
from jax.experimental.pallas import tpu as pltpu


def _round_up(x, m):
    return ((x + m - 1) // m) * m


def _label_smoothing_ce_kernel(logits_ref, targets_ref, out_ref, acc_ref, *,
                               smoothing, num_classes, n_total, inv_n):
    i = pl.program_id(0)

    @pl.when(i == 0)
    def _():
        acc_ref[0] = jnp.float32(0.0)

    logits = logits_ref[...].astype(jnp.float32)            # (TN, C)
    tgt = targets_ref[...]                                   # (TN, 1) int32
    tn, c = logits.shape                                     # static ints

    # Numerically-stable logsumexp along the class (lane) axis.
    row_max = jnp.max(logits, axis=-1, keepdims=True)        # (TN, 1)
    shifted = logits - row_max
    sum_exp = jnp.sum(jnp.exp(shifted), axis=-1, keepdims=True)
    logz = row_max + jnp.log(sum_exp)                        # (TN, 1)

    # logit at the target class via a masked lane select + reduce
    # (no one_hot / smoothed materialization).
    class_ids = jax.lax.broadcasted_iota(jnp.int32, (tn, c), 1)
    logit_at_tgt = jnp.sum(jnp.where(class_ids == tgt, logits, 0.0),
                           axis=-1, keepdims=True)           # (TN, 1)
    sum_logits = jnp.sum(logits, axis=-1, keepdims=True)     # (TN, 1)

    one_m_s = jnp.float32(1.0 - smoothing)
    s_over_c = jnp.float32(smoothing / num_classes)
    per_row = (one_m_s * (logz - logit_at_tgt)
               + s_over_c * (num_classes * logz - sum_logits))  # (TN, 1)

    # Mask padded rows of a ragged last block out of the sum.
    row_ids = i * tn + jax.lax.broadcasted_iota(jnp.int32, (tn, 1), 0)
    per_row = jnp.where(row_ids < n_total, per_row, 0.0)

    acc_ref[0] += jnp.sum(per_row)

    @pl.when(i == pl.num_programs(0) - 1)
    def _():
        out_ref[0, 0] = acc_ref[0] * jnp.float32(inv_n)


def label_smoothing_cross_entropy(logits, targets, num_classes, smoothing=0.1,
                                  block_rows=None):
    """logits: (N, C) float (f32 or bf16), targets: (N,) int. Scalar f32 loss."""
    n, c = logits.shape
    assert c == num_classes
    targets_2d = targets.astype(jnp.int32).reshape(n, 1)

    itemsize = jnp.dtype(logits.dtype).itemsize
    if block_rows is None:
        # ~4 MiB per logits buffer (x2 for double-buffering) keeps us well
        # under v7x's 64 MiB VMEM while amortizing per-step overhead.
        per_buf_budget = 4 * 1024 * 1024
        block_rows = per_buf_budget // max(1, c * itemsize)
        block_rows = max(8, min(1024, (block_rows // 8) * 8))
    # Never exceed the (sublane-padded) batch size.
    block_rows = max(8, min(int(block_rows), _round_up(n, 8)))
    grid = (pl.cdiv(n, block_rows),)

    # Explicit VMEM budget: double-buffered logits + targets blocks, 2x
    # headroom for in-kernel intermediates.
    vmem_bytes = 2 * block_rows * c * itemsize + 2 * block_rows * 4
    vmem_limit = int(min(64 * 1024 * 1024, max(4 * 1024 * 1024, 2 * vmem_bytes)))

    kernel = functools.partial(
        _label_smoothing_ce_kernel,
        smoothing=float(smoothing),
        num_classes=int(num_classes),
        n_total=int(n),
        inv_n=1.0 / float(n),
    )

    out = pl.pallas_call(
        kernel,
        out_shape=jax.ShapeDtypeStruct((1, 1), jnp.float32),
        grid=grid,
        in_specs=[
            pl.BlockSpec((block_rows, c), lambda i: (i, 0)),   # logits block
            pl.BlockSpec((block_rows, 1), lambda i: (i, 0)),   # targets block
        ],
        out_specs=pl.BlockSpec((1, 1), lambda i: (0, 0),
                               memory_space=pltpu.SMEM),
        scratch_shapes=[pltpu.SMEM((1,), jnp.float32)],
        compiler_params=pltpu.CompilerParams(
            # Accumulator is carried across the batch axis -> "arbitrary".
            dimension_semantics=("arbitrary",),
            vmem_limit_bytes=vmem_limit,
        ),
    )(logits, targets_2d)
    return out[0, 0]


def _reference(logits, targets, num_classes, smoothing=0.1):
    one_hot = jax.nn.one_hot(targets, num_classes, dtype=jnp.float32)
    smoothed = one_hot * (1.0 - smoothing) + smoothing / num_classes
    log_probs = jax.nn.log_softmax(logits.astype(jnp.float32), axis=-1)
    return jnp.mean(-jnp.sum(smoothed * log_probs, axis=-1))


if __name__ == "__main__":
    NUM_CLASSES = 32
    SMOOTHING = 0.1

    key = jax.random.PRNGKey(0)

    # Case 1: toy shape, single grid step.
    k1, k2, k3, k4 = jax.random.split(key, 4)
    logits_a = jax.random.normal(k1, (8, NUM_CLASSES), dtype=jnp.float32)
    targets_a = jax.random.randint(k2, (8,), 0, NUM_CLASSES, dtype=jnp.int32)
    loss_a = label_smoothing_cross_entropy(logits_a, targets_a, NUM_CLASSES, SMOOTHING)
    loss_a = jax.block_until_ready(loss_a)
    ref_a = _reference(logits_a, targets_a, NUM_CLASSES, SMOOTHING)
    assert jnp.allclose(loss_a, ref_a, atol=1e-5, rtol=1e-5), (loss_a, ref_a)

    # Case 2: multi-block grid with a ragged last block (exercises the
    # accumulator, the row masking and the total-N mean).
    logits_b = jax.random.normal(k3, (20, NUM_CLASSES), dtype=jnp.float32)
    targets_b = jax.random.randint(k4, (20,), 0, NUM_CLASSES, dtype=jnp.int32)
    loss_b = label_smoothing_cross_entropy(logits_b, targets_b, NUM_CLASSES,
                                           SMOOTHING, block_rows=8)
    loss_b = jax.block_until_ready(loss_b)
    ref_b = _reference(logits_b, targets_b, NUM_CLASSES, SMOOTHING)
    assert jnp.allclose(loss_b, ref_b, atol=1e-5, rtol=1e-5), (loss_b, ref_b)

    print("KERNEL_OK")
</pallas_src>

<mosaic_0001>
module attributes {stable_mosaic.version = 11 : i64} {
  func.func @_label_smoothing_ce_kernel(%arg0: i32, %arg1: memref<8x32xf32, #tpu.memory_space<vmem>>, %arg2: memref<8x1xi32, #tpu.memory_space<vmem>>, %arg3: memref<1x1xf32, #tpu.memory_space<smem>>, %arg4: memref<1xf32, #tpu.memory_space<smem>>) attributes {dimension_semantics = [#tpu.dimension_semantics<arbitrary>], iteration_bounds = array<i64: 1>, scalar_prefetch = 0 : i64, scratch_operands = 1 : i64, tpu.core_type = #tpu.core_type<tc>, window_params = [{transform_indices = @transform_0, window_bounds = array<i64: 8, 32>}, {transform_indices = @transform_1, window_bounds = array<i64: 8, 1>}, {transform_indices = @transform_2, window_bounds = array<i64: 1, 1>}]} {
    %c0_i32 = arith.constant 0 : i32
    %0 = arith.cmpi eq, %arg0, %c0_i32 : i32
    %1 = arith.extui %0 : i1 to i32
    %c0_i32_0 = arith.constant 0 : i32
    %2 = arith.cmpi ne, %1, %c0_i32_0 : i32
    scf.if %2 {
      %cst_18 = arith.constant 0.000000e+00 : f32
      %c0_19 = arith.constant 0 : index
      %50 = memref.load %arg4[%c0_19] : memref<1xf32, #tpu.memory_space<smem>>
      memref.store %cst_18, %arg4[%c0_19] : memref<1xf32, #tpu.memory_space<smem>>
    } else {
    }
    %c0 = arith.constant 0 : index
    %c0_1 = arith.constant 0 : index
    %3 = vector.load %arg1[%c0, %c0_1] : memref<8x32xf32, #tpu.memory_space<vmem>>, vector<8x32xf32>
    %c0_2 = arith.constant 0 : index
    %c0_3 = arith.constant 0 : index
    %4 = vector.load %arg2[%c0_2, %c0_3] : memref<8x1xi32, #tpu.memory_space<vmem>>, vector<8x1xi32>
    %cst = arith.constant dense<0xFF800000> : vector<8xf32>
    %5 = vector.multi_reduction <maximumf>, %3, %cst [1] : vector<8x32xf32> to vector<8xf32>
    %6 = vector.shape_cast %5 : vector<8xf32> to vector<8x1xf32>
    %7 = vector.broadcast %6 : vector<8x1xf32> to vector<8x32xf32>
    %8 = arith.subf %3, %7 : vector<8x32xf32>
    %9 = math.exp %8 : vector<8x32xf32>
    %cst_4 = arith.constant dense<0.000000e+00> : vector<8xf32>
    %10 = vector.multi_reduction <add>, %9, %cst_4 [1] : vector<8x32xf32> to vector<8xf32>
    %11 = vector.shape_cast %10 : vector<8xf32> to vector<8x1xf32>
    %12 = math.log %11 : vector<8x1xf32>
    %13 = arith.addf %6, %12 : vector<8x1xf32>
    %14 = tpu.iota {dimensions = array<i32: 1>} : vector<8x32xi32>
    %15 = vector.broadcast %4 : vector<8x1xi32> to vector<8x32xi32>
    %16 = arith.cmpi eq, %14, %15 : vector<8x32xi32>
    %cst_5 = arith.constant 0.000000e+00 : f32
    %17 = vector.broadcast %cst_5 : f32 to vector<8x32xf32>
    %18 = arith.select %16, %3, %17 : vector<8x32xi1>, vector<8x32xf32>
    %cst_6 = arith.constant dense<0.000000e+00> : vector<8xf32>
    %19 = vector.multi_reduction <add>, %18, %cst_6 [1] : vector<8x32xf32> to vector<8xf32>
    %20 = vector.shape_cast %19 : vector<8xf32> to vector<8x1xf32>
    %cst_7 = arith.constant dense<0.000000e+00> : vector<8xf32>
    %21 = vector.multi_reduction <add>, %3, %cst_7 [1] : vector<8x32xf32> to vector<8xf32>
    %22 = vector.shape_cast %21 : vector<8xf32> to vector<8x1xf32>
    %23 = arith.subf %13, %20 : vector<8x1xf32>
    %cst_8 = arith.constant 0.899999976 : f32
    %24 = vector.broadcast %cst_8 : f32 to vector<8x1xf32>
    %25 = arith.mulf %24, %23 : vector<8x1xf32>
    %cst_9 = arith.constant 3.200000e+01 : f32
    %26 = vector.broadcast %cst_9 : f32 to vector<8x1xf32>
    %27 = arith.mulf %26, %13 : vector<8x1xf32>
    %28 = arith.subf %27, %22 : vector<8x1xf32>
    %cst_10 = arith.constant 3.125000e-03 : f32
    %29 = vector.broadcast %cst_10 : f32 to vector<8x1xf32>
    %30 = arith.mulf %29, %28 : vector<8x1xf32>
    %31 = arith.addf %25, %30 : vector<8x1xf32>
    %c8_i32 = arith.constant 8 : i32
    %32 = arith.muli %arg0, %c8_i32 : i32
    %33 = tpu.iota {dimensions = array<i32: 0>} : vector<8x1xi32>
    %34 = vector.broadcast %32 : i32 to vector<8x1xi32>
    %35 = arith.addi %34, %33 : vector<8x1xi32>
    %c8_i32_11 = arith.constant 8 : i32
    %36 = vector.broadcast %c8_i32_11 : i32 to vector<8x1xi32>
    %37 = arith.cmpi slt, %35, %36 : vector<8x1xi32>
    %cst_12 = arith.constant 0.000000e+00 : f32
    %38 = vector.broadcast %cst_12 : f32 to vector<8x1xf32>
    %39 = arith.select %37, %31, %38 : vector<8x1xi1>, vector<8x1xf32>
    %c0_13 = arith.constant 0 : index
    %40 = memref.load %arg4[%c0_13] : memref<1xf32, #tpu.memory_space<smem>>
    %41 = vector.shape_cast %39 : vector<8x1xf32> to vector<1x8x1xf32>
    %cst_14 = arith.constant dense<0.000000e+00> : vector<1xf32>
    %42 = vector.multi_reduction <add>, %41, %cst_14 [1, 2] : vector<1x8x1xf32> to vector<1xf32>
    %43 = vector.shape_cast %42 : vector<1xf32> to vector<1x1x1xf32>
    %44 = vector.extract %43[0, 0, 0] : f32 from vector<1x1x1xf32>
    %45 = arith.addf %40, %44 : f32
    %c0_15 = arith.constant 0 : index
    %46 = memref.load %arg4[%c0_15] : memref<1xf32, #tpu.memory_space<smem>>
    memref.store %45, %arg4[%c0_15] : memref<1xf32, #tpu.memory_space<smem>>
    %c0_i32_16 = arith.constant 0 : i32
    %47 = arith.cmpi eq, %arg0, %c0_i32_16 : i32
    %48 = arith.extui %47 : i1 to i32
    %c0_i32_17 = arith.constant 0 : i32
    %49 = arith.cmpi ne, %48, %c0_i32_17 : i32
    scf.if %49 {
      %c0_18 = arith.constant 0 : index
      %50 = memref.load %arg4[%c0_18] : memref<1xf32, #tpu.memory_space<smem>>
      %cst_19 = arith.constant 1.250000e-01 : f32
      %51 = arith.mulf %50, %cst_19 : f32
      %c0_20 = arith.constant 0 : index
      %c0_21 = arith.constant 0 : index
      %52 = memref.load %arg3[%c0_20, %c0_21] : memref<1x1xf32, #tpu.memory_space<smem>>
      memref.store %51, %arg3[%c0_20, %c0_21] : memref<1x1xf32, #tpu.memory_space<smem>>
    } else {
    }
    return
  }
  func.func @transform_0(%arg0: i32) -> (i32, i32) {
    %c0_i32 = arith.constant 0 : i32
    %c0_i32_0 = arith.constant 0 : i32
    return %arg0, %c0_i32 : i32, i32
  }
  func.func @transform_1(%arg0: i32) -> (i32, i32) {
    %c0_i32 = arith.constant 0 : i32
    %c0_i32_0 = arith.constant 0 : i32
    return %arg0, %c0_i32 : i32, i32
  }
  func.func @transform_2(%arg0: i32) -> (i32, i32) {
    %c0_i32 = arith.constant 0 : i32
    %c0_i32_0 = arith.constant 0 : i32
    %c0_i32_1 = arith.constant 0 : i32
    return %c0_i32, %c0_i32_0 : i32, i32
  }
}

</mosaic_0001>

<bundles_post_ra>
// kernel: tpu_custom_call.1
= control target key start
LH: loop header
LB: loop body
LE: loop exit
PB: predicated region body
PF: predicated region fallthrough
CT: control target
= control target key end

     0   :  { %vm20_vm0 = vcmask 261120   ;;  %s154_s0 = inlined_call_operand.vmem [shape: f32[8,32], index: 0, kind: input, shape index: {}]   ;;  %s155_s1 = inlined_call_operand.vmem [shape: s32[8,1], index: 1, kind: input, shape index: {}]   ;;  %s156_s2 = inlined_call_operand.hbm [shape: f32[1,1], index: 2, kind: output, shape index: {}]  }
   0x1   :  { %v18_v0 = vld [vmem:[%s154_s0] sm:$0xff] }
   0x2   :  { %7 = vsyncpa [#allocation4], 0  ;;  %v21_v1 = vsel %vm20_vm0, %v18_v0, -inf  ;;  %v115_v2 = vmov 0   ;;  %v19_v3 = vld [vmem:[%s155_s1] sm:$0xff]  ;;  %v33_v7 = vlaneseq  ;;  %v43_v14 = vsel %vm20_vm0, %v18_v0, 0.0 }
   0x3   :  { %98 = vset.pattern.permute.xlu0 %v115_v2  ;;  %vm60_vm2 = vcmask 7168   ;;  %s103_s15 = scalar_lea.hbm %s156_s2, 16 }
   0x4   :  { %22 = vmax.xlane.f32.xlu0 %v21_v1  ;;  %v34_v8 = vand.u32 127, %v33_v7  ;;  %p104_p0 = scmp.ne.s32.totalorder %s156_s2, %s103_s15  ;;  %p107_p1 = scmp.lt.u32.totalorder %s103_s15, %s156_s2 }
   0x6   :  { %p109_p2 = pnand %p107_p1, %p104_p0 }
  0x1a   :  { %36 = vperm.xlu0 %98, %v19_v3  }
  0x91   :  { %v23_v4 = vpop.xlane.xlu0 %22 }
  0x92   :  { %v24_v5 = vsub.f32 %v18_v0, %v23_v4 }
  0x94   :  { %v25_v6 = vmul.f32 1.442695, %v24_v5 }
  0x96   :  { %99 = vpow2.f32 %v25_v6 }
  0x99   :  { %v37_v9 = vpop.permute.xlu0 %36 }
  0x9a   :  { %vm38_vm1 = vcmp.eq.s32.totalorder %v34_v8, %v37_v9 }
  0x9b   :  { %v39_v11 = vsel %vm38_vm1, %v18_v0, 0.0 }
  0x9c   :  { %v40_v13 = vsel %vm20_vm0, %v39_v11, 0.0 }
  0xa0   :  { %v100_v10 = vpop.eup %99 }
  0xa1   :  { %v27_v12 = vsel %vm20_vm0, %v100_v10, 0.0 }
  0xa2   :  { %28 = vadd.xlane.f32.xlu1 %v27_v12 }
  0xa6   :  { %41 = vadd.xlane.f32.xlu1 %v40_v13 }
  0xaa   :  { %44 = vadd.xlane.f32.xlu1 %v43_v14 }
 0x12f   :  { %v29_v15 = vpop.xlane.xlu1 %28 }
 0x130   :  { %101 = vlog2.f32 %v29_v15 }
 0x133   :  { %v42_v16 = vpop.xlane.xlu1 %41 }
 0x137   :  { %v45_v20 = vpop.xlane.xlu1 %44 }
 0x13a   :  { %v102_v17 = vpop.eup %101 }
 0x13b   :  { %v31_v18 = vmul.f32 0.6931472, %v102_v17 }
 0x13d   :  { %v32_v19 = vadd.f32 %v31_v18, %v23_v4 }
 0x13f   :  { %v46_v21 = vsub.f32 %v32_v19, %v42_v16  ;;  %v48_v22 = vmul.f32 32.0, %v32_v19 }
 0x141   :  { %v49_v23 = vsub.f32 %v48_v22, %v45_v20  ;;  %v47_v24 = vmul.f32 0.9, %v46_v21 }
 0x143   :  { %v50_v25 = vmul.f32 0.003125, %v49_v23 }
 0x145   :  { %v51_v26 = vadd.f32 %v50_v25, %v47_v24 }
 0x147   :  { %v61_v27 = vsel %vm60_vm2, %v51_v26, 0.0 }
 0x148   :  { %62 = vadd.xlane.f32.xlu1 %v61_v27 }
 0x1d5   :  { %v63_v28 = vpop.xlane.xlu1 %62 }
 0x1d6   :  { %v64_v29 = vrot.slane %v63_v28, 4 }
 0x1d8   :  { %v65_v30 = vadd.f32 %v64_v29, %v63_v28 }
 0x1da   :  { %v66_v31 = vrot.slane %v65_v30, 2 }
 0x1dc   :  { %v67_v32 = vadd.f32 %v66_v31, %v65_v30 }
 0x1de   :  { %v68_v33 = vrot.slane %v67_v32, 1 }
 0x1e0   :  { %v69_v34 = vadd.f32 %v68_v33, %v67_v32 }
 0x1e2   :  { %94 = vpush %v69_v34 }
 0x213   :  { %s95_s0 = spop %94 }
 0x214   :  { %s78_s1 = smul.f32 0.125, %s95_s0 }
 0x216   :  { %80 = sst [smem:[#allocation3]] %s78_s1 }
 0x217   :  { %112 = shalt.err (!%p109_p2)
}
 0x218   :  { %s116_s20 = smov [#allocation3]  }
 0x219   :  { %88 = dma.smem_to_hbm %s116_s20, 16, %s156_s2, [#allocation4]  }
 0x21a   :  { %113 = dma.done.wait [#allocation4], 16  }
 0x21b   :  { %114 = vsyncadd [#allocation4], 4294967280 }
 0x21c   :  { %92 = sfence }
 0x21d   :  { %93 = vsyncpa [#allocation4], 1 }

</bundles_post_ra>
